<compile_context>
chip_gen: v5e
topology: v5e:2x2
jax: 0.10.0
libtpu: 0.0.40
codegen_flags: <defaults>
</compile_context>

<pallas_src>
import functools
import math

import jax
import jax.numpy as jnp
from jax.experimental import pallas as pl
from jax.experimental.pallas import tpu as pltpu

_NEG_BIG = -1e30      # bias for padded (non-existent) classes -> exp() contributes 0
_LANE = 128
_SUBLANE = 8


def _round_up(a: int, b: int) -> int:
    return (a + b - 1) // b * b


def _vmem_budgets():
    """(tile budget, vmem_limit or None-for-computed) based on the TPU generation."""
    cap = None
    try:
        info = pltpu.get_tpu_info()
        cap = getattr(info, "vmem_capacity_bytes", None)
    except Exception:
        cap = None
    if not cap:
        cap = 64 * 1024 * 1024                      # unknown -> assume v7x-class (tight)
    if cap >= 96 * 1024 * 1024:                     # v5e / v6e: 128 MiB physical VMEM
        return 64 * 1024 * 1024, 96 * 1024 * 1024
    return 24 * 1024 * 1024, None                   # v7x: 64 MiB physical, compute limit


def _working_set_bytes(tile_n, d, x_itemsize, c_pad, logits_itemsize):
    """Conservative double-buffered VMEM working-set estimate."""
    resident = (2 * _round_up(d, _SUBLANE) * c_pad * x_itemsize   # W^T buffers
                + 2 * _SUBLANE * c_pad * 4)                       # bias buffers
    per_row = (2 * _round_up(d, _LANE) * x_itemsize   # x tile, double-buffered
               + 2 * c_pad * logits_itemsize          # logits out tile (0 if loss-only)
               + 2 * _LANE * 4                        # int32 labels (lane-padded in VMEM)
               + 4 * c_pad * 4)                       # slack for f32 compute temporaries
    loss_part = 2 * _SUBLANE * _LANE * 4              # per-tile loss partial block
    return resident + tile_n * per_row + loss_part


def _choose_tile_n(n, d, x_itemsize, c_pad, logits_itemsize, budget):
    """Largest batch tile keeping the double-buffered working set within `budget`,
    while keeping >= 2 grid steps so the v7x second TensorCore is used."""
    resident = (2 * _round_up(d, _SUBLANE) * c_pad * x_itemsize
                + 2 * _SUBLANE * c_pad * 4)
    per_row = (2 * _round_up(d, _LANE) * x_itemsize
               + 2 * c_pad * logits_itemsize
               + 2 * _LANE * 4
               + 4 * c_pad * 4)
    tile = max(_SUBLANE, (budget - resident) // per_row)
    tile = min(tile, 1024)                          # diminishing returns beyond ~1K rows
    tile = min(tile, _round_up(n, _SUBLANE))
    if n > _SUBLANE:                                # keep G >= 2 (v7x megacore)
        tile = min(tile, _round_up(pl.cdiv(n, 2), _SUBLANE))
    if tile >= 256:
        tile = (tile // 256) * 256                  # 256-row M tiles match v6e MXU feed
    elif tile >= 128:
        tile = (tile // 128) * 128
    else:
        tile = (tile // _SUBLANE) * _SUBLANE
    return max(_SUBLANE, int(tile))


def _logreg_kernel(x_ref, wt_ref, b_ref, y_ref, *out_refs,
                   n_valid: int, tile_n: int, return_logits: bool):
    if return_logits:
        logits_ref, losspart_ref = out_refs
    else:
        (losspart_ref,) = out_refs

    i = pl.program_id(0)

    x = x_ref[...]          # [TILE_N, D]    bf16 (or f32)
    wt = wt_ref[...]        # [D, C_pad]     bf16 (or f32), W^T with padded classes = 0
    b = b_ref[...]          # [1, C_pad]     f32, padded classes = -1e30
    y = y_ref[...]          # [TILE_N, 1]    int32

    # --- linear layer on the MXU (f32 accumulation), lane-dense 128-class block ---
    logits = jnp.dot(x, wt, preferred_element_type=jnp.float32) + b   # [TILE_N, C_pad] f32

    if return_logits:
        # Output array is (N, C): the write DMA masks both the padded class lanes and
        # any rows >= N of the ragged last tile (garbage from padded reads never lands).
        logits_ref[...] = logits.astype(logits_ref.dtype)

    # --- softmax cross-entropy with integer labels ---
    m = jnp.max(logits, axis=-1, keepdims=True)                              # [TILE_N, 1]
    lse = jnp.log(jnp.sum(jnp.exp(logits - m), axis=-1, keepdims=True)) + m  # [TILE_N, 1]

    cls_idx = jax.lax.broadcasted_iota(jnp.int32, logits.shape, 1)           # [TILE_N, C_pad]
    picked = jnp.sum(jnp.where(cls_idx == y, logits, 0.0), axis=-1, keepdims=True)

    per_sample = lse - picked                                                # [TILE_N, 1]

    # Mask batch-padding rows of the ragged last tile (select, so NaN/Inf in garbage
    # rows is discarded); the 1/N (global N!) happens in the wrapper.
    row_ids = jax.lax.broadcasted_iota(jnp.int32, per_sample.shape, 0) + i * tile_n
    per_sample = jnp.where(row_ids < n_valid, per_sample, 0.0)

    partial = jnp.sum(per_sample)                                            # scalar
    losspart_ref[...] = jnp.full(losspart_ref.shape, partial, dtype=jnp.float32)


def logistic_regression_forward(x, weight, bias, y, *,
                                tile_n=None,
                                matmul_dtype=jnp.bfloat16,
                                logits_dtype=jnp.float32,
                                return_logits=True):
    """x: [N, D] f32, weight: [C, D] f32, bias: [C] f32, y: [N] int.

    Returns (logits [N, C] `logits_dtype`, loss scalar f32) matching the PyTorch module,
    or just the loss scalar when return_logits=False (skips the logits HBM writeback).

    matmul_dtype=jnp.bfloat16 (default) feeds the MXU in bf16 with f32 accumulation and
    f32 bias/CE math (tolerance ~1e-3 vs. the f32 module).  Pass matmul_dtype=jnp.float32
    for bit-faithful numerics; note that roughly doubles the x HBM read traffic.
    """
    N, D = x.shape
    C = weight.shape[0]
    C_pad = _round_up(max(C, _LANE), _LANE)

    budget, vmem_limit = _vmem_budgets()

    x_itemsize = jnp.dtype(matmul_dtype).itemsize
    logits_itemsize = jnp.dtype(logits_dtype).itemsize if return_logits else 0
    if tile_n is None:
        tile_n = _choose_tile_n(N, D, x_itemsize, C_pad, logits_itemsize, budget)
    G = pl.cdiv(N, tile_n)

    if vmem_limit is None:
        # v7x: tight, computed limit (64 MiB physical / 32 MiB default scoped VMEM).
        working = _working_set_bytes(tile_n, D, x_itemsize, C_pad, logits_itemsize)
        vmem_limit = min(48 * 1024 * 1024,
                         max(working + 8 * 1024 * 1024, 32 * 1024 * 1024))

    # Small one-time weight/bias preprocessing: fold the transpose into the class-pad
    # (single tiny rewrite of W; no separate weight.T HBM round trip).  NOTE: if
    # logits_dtype is bf16 the -1e30 padded-class bias saturates to -inf in the VMEM
    # block, but those lanes are never written back (masked output DMA).
    wt_pad = jnp.zeros((D, C_pad), matmul_dtype).at[:, :C].set(
        weight.T.astype(matmul_dtype))
    b_pad = jnp.full((1, C_pad), _NEG_BIG, jnp.float32).at[0, :C].set(
        bias.astype(jnp.float32))

    # No host-side padding pass over x/y: ragged last tile handled by partial-block
    # reads + in-kernel row masking + masked output writes.
    xk = x.astype(matmul_dtype)
    yk = y.astype(jnp.int32).reshape(N, 1)
    # TODO(synk): labels kept as a (TILE_N, 1) int32 VMEM block (lane-padded in VMEM but
    # HBM-traffic-minimal); vector loads from SMEM scalar-prefetch are not supported.

    kernel = functools.partial(_logreg_kernel, n_valid=N, tile_n=tile_n,
                               return_logits=return_logits)

    in_specs = [
        pl.BlockSpec((tile_n, D), lambda i: (i, 0)),              # x tile (pipelined)
        pl.BlockSpec((D, C_pad), lambda i: (0, 0)),               # W^T, VMEM-resident
        pl.BlockSpec((1, C_pad), lambda i: (0, 0)),               # bias, VMEM-resident
        pl.BlockSpec((tile_n, 1), lambda i: (i, 0)),              # labels tile
    ]
    out_specs = []
    out_shape = []
    if return_logits:
        # Lane-dense 128-class VMEM block; HBM array is unpadded (N, C) so the write
        # DMA masks padded classes / padded rows and no wrapper slice-copy is needed.
        out_specs.append(pl.BlockSpec((tile_n, C_pad), lambda i: (i, 0)))
        out_shape.append(jax.ShapeDtypeStruct((N, C), logits_dtype))
    out_specs.append(pl.BlockSpec((1, _SUBLANE, _LANE), lambda i: (i, 0, 0)))
    out_shape.append(jax.ShapeDtypeStruct((G, _SUBLANE, _LANE), jnp.float32))

    results = pl.pallas_call(
        kernel,
        grid=(G,),
        in_specs=in_specs,
        out_specs=out_specs,
        out_shape=out_shape,
        compiler_params=pltpu.CompilerParams(
            dimension_semantics=("parallel",),       # batch tiles independent -> 2 TCs on v7x
            vmem_limit_bytes=int(vmem_limit)),
    )(xk, wt_pad, b_pad, yk)

    if return_logits:
        logits, loss_parts = results
    else:
        (loss_parts,) = results
        logits = None

    loss = jnp.sum(loss_parts[:, 0, 0]) * (1.0 / N)  # mean over the GLOBAL batch size
    return (logits, loss) if return_logits else loss


def init_params(key, num_dim, num_class):
    # xavier_uniform_ on weight of shape [num_class, num_dim], bias = 0
    bound = math.sqrt(6.0 / (num_dim + num_class))
    weight = jax.random.uniform(
        key, (num_class, num_dim), dtype=jnp.float32, minval=-bound, maxval=bound)
    bias = jnp.zeros((num_class,), dtype=jnp.float32)
    return weight, bias


if __name__ == "__main__":
    num_dim = 32
    num_class = 8
    batch = 16

    root = jax.random.PRNGKey(0)
    k_w, k_x, k_y = jax.random.split(root, 3)

    weight, bias = init_params(k_w, num_dim, num_class)
    x = jax.random.normal(k_x, (batch, num_dim), dtype=jnp.float32)
    y = jax.random.randint(k_y, (batch,), 0, num_class, dtype=jnp.int32)

    # --- default perf path: bf16 MXU inputs, f32 accumulation / CE, f32 logits out ---
    logits, loss = logistic_regression_forward(x, weight, bias, y)
    jax.block_until_ready((logits, loss))

    # reference on identically bf16-rounded inputs (matmul accumulates in f32)
    xb = x.astype(jnp.bfloat16).astype(jnp.float32)
    wb = weight.astype(jnp.bfloat16).astype(jnp.float32)
    ref_logits = xb @ wb.T + bias
    ref_lse = jax.scipy.special.logsumexp(ref_logits, axis=-1)
    ref_loss = jnp.mean(ref_lse - ref_logits[jnp.arange(batch), y])
    assert logits.shape == (batch, num_class)
    assert jnp.allclose(logits, ref_logits, atol=1e-3, rtol=1e-3)
    assert jnp.allclose(loss, ref_loss, atol=1e-3, rtol=1e-3)

    # --- loss-only path: no logits writeback at all ---
    loss_only = logistic_regression_forward(x, weight, bias, y, return_logits=False)
    jax.block_until_ready(loss_only)
    assert jnp.allclose(loss_only, ref_loss, atol=1e-3, rtol=1e-3)

    # --- exact-f32 path (numerics of the original PyTorch module) ---
    logits32, loss32 = logistic_regression_forward(
        x, weight, bias, y, matmul_dtype=jnp.float32)
    jax.block_until_ready((logits32, loss32))
    ref_logits32 = x @ weight.T + bias
    ref_lse32 = jax.scipy.special.logsumexp(ref_logits32, axis=-1)
    ref_loss32 = jnp.mean(ref_lse32 - ref_logits32[jnp.arange(batch), y])
    assert jnp.allclose(logits32, ref_logits32, atol=1e-5, rtol=1e-5)
    assert jnp.allclose(loss32, ref_loss32, atol=1e-5, rtol=1e-5)

    # --- ragged batch (no host-side pad): last tile is a partial, masked block ---
    nr = 13
    xr, yr = x[:nr], y[:nr]
    logits_r, loss_r = logistic_regression_forward(
        xr, weight, bias, yr, matmul_dtype=jnp.float32)
    jax.block_until_ready((logits_r, loss_r))
    ref_logits_r = xr @ weight.T + bias
    ref_lse_r = jax.scipy.special.logsumexp(ref_logits_r, axis=-1)
    ref_loss_r = jnp.mean(ref_lse_r - ref_logits_r[jnp.arange(nr), yr])
    assert logits_r.shape == (nr, num_class)
    assert jnp.allclose(logits_r, ref_logits_r, atol=1e-5, rtol=1e-5)
    assert jnp.allclose(loss_r, ref_loss_r, atol=1e-5, rtol=1e-5)

    print("KERNEL_OK")
</pallas_src>

<mosaic_0001>
module attributes {stable_mosaic.version = 11 : i64} {
  func.func @_logreg_kernel(%arg0: i32, %arg1: memref<8x32xbf16, #tpu.memory_space<vmem>>, %arg2: memref<32x128xbf16, #tpu.memory_space<vmem>>, %arg3: memref<1x128xf32, #tpu.memory_space<vmem>>, %arg4: memref<8x1xi32, #tpu.memory_space<vmem>>, %arg5: memref<8x128xf32, #tpu.memory_space<vmem>>, %arg6: memref<1x8x128xf32, #tpu.memory_space<vmem>>) attributes {dimension_semantics = [#tpu.dimension_semantics<parallel>], iteration_bounds = array<i64: 2>, scalar_prefetch = 0 : i64, scratch_operands = 0 : i64, tpu.core_type = #tpu.core_type<tc>, window_params = [{transform_indices = @transform_0, window_bounds = array<i64: 8, 32>}, {pipeline_mode = #tpu.pipeline_mode<synchronous>, transform_indices = @transform_1, window_bounds = array<i64: 32, 128>}, {pipeline_mode = #tpu.pipeline_mode<synchronous>, transform_indices = @transform_2, window_bounds = array<i64: 1, 128>}, {transform_indices = @transform_3, window_bounds = array<i64: 8, 1>}, {transform_indices = @transform_4, window_bounds = array<i64: 8, 128>}, {transform_indices = @transform_5, window_bounds = array<i64: 1, 8, 128>}]} {
    %c0 = arith.constant 0 : index
    %c0_0 = arith.constant 0 : index
    %0 = vector.load %arg1[%c0, %c0_0] : memref<8x32xbf16, #tpu.memory_space<vmem>>, vector<8x32xbf16>
    %c0_1 = arith.constant 0 : index
    %c0_2 = arith.constant 0 : index
    %1 = vector.load %arg2[%c0_1, %c0_2] : memref<32x128xbf16, #tpu.memory_space<vmem>>, vector<32x128xbf16>
    %c0_3 = arith.constant 0 : index
    %c0_4 = arith.constant 0 : index
    %2 = vector.load %arg3[%c0_3, %c0_4] : memref<1x128xf32, #tpu.memory_space<vmem>>, vector<1x128xf32>
    %c0_5 = arith.constant 0 : index
    %c0_6 = arith.constant 0 : index
    %3 = vector.load %arg4[%c0_5, %c0_6] : memref<8x1xi32, #tpu.memory_space<vmem>>, vector<8x1xi32>
    %cst = arith.constant dense<0.000000e+00> : vector<8x128xf32>
    %4 = tpu.matmul %0, %1, %cst {dimension_numbers = #tpu.dot_dimension_numbers<[1], [0], [0], [1], [0, 0, 1, 1], [], []>} : vector<8x32xbf16>, vector<32x128xbf16>, vector<8x128xf32> -> vector<8x128xf32>
    %5 = vector.broadcast %2 : vector<1x128xf32> to vector<8x128xf32>
    %6 = arith.addf %4, %5 : vector<8x128xf32>
    %c0_7 = arith.constant 0 : index
    %c0_8 = arith.constant 0 : index
    %7 = vector.load %arg5[%c0_7, %c0_8] : memref<8x128xf32, #tpu.memory_space<vmem>>, vector<8x128xf32>
    tpu.vector_store %arg5[%c0_7, %c0_8], %6 {strides = array<i32>} : memref<8x128xf32, #tpu.memory_space<vmem>>, vector<8x128xf32>,
    %cst_9 = arith.constant dense<0xFF800000> : vector<8xf32>
    %8 = vector.multi_reduction <maximumf>, %6, %cst_9 [1] : vector<8x128xf32> to vector<8xf32>
    %9 = vector.shape_cast %8 : vector<8xf32> to vector<8x1xf32>
    %10 = vector.broadcast %9 : vector<8x1xf32> to vector<8x128xf32>
    %11 = arith.subf %6, %10 : vector<8x128xf32>
    %12 = math.exp %11 : vector<8x128xf32>
    %cst_10 = arith.constant dense<0.000000e+00> : vector<8xf32>
    %13 = vector.multi_reduction <add>, %12, %cst_10 [1] : vector<8x128xf32> to vector<8xf32>
    %14 = vector.shape_cast %13 : vector<8xf32> to vector<8x1xf32>
    %15 = math.log %14 : vector<8x1xf32>
    %16 = arith.addf %15, %9 : vector<8x1xf32>
    %17 = tpu.iota {dimensions = array<i32: 1>} : vector<8x128xi32>
    %18 = vector.broadcast %3 : vector<8x1xi32> to vector<8x128xi32>
    %19 = arith.cmpi eq, %17, %18 : vector<8x128xi32>
    %cst_11 = arith.constant 0.000000e+00 : f32
    %20 = vector.broadcast %cst_11 : f32 to vector<8x128xf32>
    %21 = arith.select %19, %6, %20 : vector<8x128xi1>, vector<8x128xf32>
    %cst_12 = arith.constant dense<0.000000e+00> : vector<8xf32>
    %22 = vector.multi_reduction <add>, %21, %cst_12 [1] : vector<8x128xf32> to vector<8xf32>
    %23 = vector.shape_cast %22 : vector<8xf32> to vector<8x1xf32>
    %24 = arith.subf %16, %23 : vector<8x1xf32>
    %25 = tpu.iota {dimensions = array<i32: 0>} : vector<8x1xi32>
    %c8_i32 = arith.constant 8 : i32
    %26 = arith.muli %arg0, %c8_i32 : i32
    %27 = vector.broadcast %26 : i32 to vector<8x1xi32>
    %28 = arith.addi %25, %27 : vector<8x1xi32>
    %c16_i32 = arith.constant 16 : i32
    %29 = vector.broadcast %c16_i32 : i32 to vector<8x1xi32>
    %30 = arith.cmpi slt, %28, %29 : vector<8x1xi32>
    %cst_13 = arith.constant 0.000000e+00 : f32
    %31 = vector.broadcast %cst_13 : f32 to vector<8x1xf32>
    %32 = arith.select %30, %24, %31 : vector<8x1xi1>, vector<8x1xf32>
    %33 = vector.shape_cast %32 : vector<8x1xf32> to vector<1x8x1xf32>
    %cst_14 = arith.constant dense<0.000000e+00> : vector<1xf32>
    %34 = vector.multi_reduction <add>, %33, %cst_14 [1, 2] : vector<1x8x1xf32> to vector<1xf32>
    %35 = vector.shape_cast %34 : vector<1xf32> to vector<1x1x1xf32>
    %36 = vector.extract %35[0, 0, 0] : f32 from vector<1x1x1xf32>
    %37 = vector.broadcast %36 : f32 to vector<1x8x128xf32>
    %c0_15 = arith.constant 0 : index
    %c0_16 = arith.constant 0 : index
    %c0_17 = arith.constant 0 : index
    %38 = vector.load %arg6[%c0_15, %c0_16, %c0_17] : memref<1x8x128xf32, #tpu.memory_space<vmem>>, vector<1x8x128xf32>
    tpu.vector_store %arg6[%c0_15, %c0_16, %c0_17], %37 {strides = array<i32>} : memref<1x8x128xf32, #tpu.memory_space<vmem>>, vector<1x8x128xf32>,
    return
  }
  func.func @transform_0(%arg0: i32) -> (i32, i32) {
    %c0_i32 = arith.constant 0 : i32
    %c0_i32_0 = arith.constant 0 : i32
    return %arg0, %c0_i32 : i32, i32
  }
  func.func @transform_1(%arg0: i32) -> (i32, i32) {
    %c0_i32 = arith.constant 0 : i32
    %c0_i32_0 = arith.constant 0 : i32
    %c0_i32_1 = arith.constant 0 : i32
    return %c0_i32, %c0_i32_0 : i32, i32
  }
  func.func @transform_2(%arg0: i32) -> (i32, i32) {
    %c0_i32 = arith.constant 0 : i32
    %c0_i32_0 = arith.constant 0 : i32
    %c0_i32_1 = arith.constant 0 : i32
    return %c0_i32, %c0_i32_0 : i32, i32
  }
  func.func @transform_3(%arg0: i32) -> (i32, i32) {
    %c0_i32 = arith.constant 0 : i32
    %c0_i32_0 = arith.constant 0 : i32
    return %arg0, %c0_i32 : i32, i32
  }
  func.func @transform_4(%arg0: i32) -> (i32, i32) {
    %c0_i32 = arith.constant 0 : i32
    %c0_i32_0 = arith.constant 0 : i32
    return %arg0, %c0_i32 : i32, i32
  }
  func.func @transform_5(%arg0: i32) -> (i32, i32, i32) {
    %c0_i32 = arith.constant 0 : i32
    %c0_i32_0 = arith.constant 0 : i32
    %c0_i32_1 = arith.constant 0 : i32
    return %arg0, %c0_i32, %c0_i32_0 : i32, i32, i32
  }
}

</mosaic_0001>

<bundles_post_ra>
// kernel: tpu_custom_call.1
= control target key start
LH: loop header
LB: loop body
LE: loop exit
PB: predicated region body
PF: predicated region fallthrough
CT: control target
= control target key end

     0   :  { %11 = vsyncpa [#allocation3], 0  ;;  %s835_s0 = inlined_call_operand.hbm [shape: bf16[16,32], index: 0, kind: input, shape index: {}]   ;;  %s836_s1 = inlined_call_operand.vmem [shape: bf16[32,128], index: 1, kind: input, shape index: {}]   ;;  %s837_s2 = inlined_call_operand.vmem [shape: f32[1,128], index: 2, kind: input, shape index: {}]   ;;  %s838_s3 = inlined_call_operand.vmem [shape: s32[16,1], index: 3, kind: input, shape index: {}]   ;;  %s839_s4 = inlined_call_operand.vmem [shape: f32[16,8], index: 4, kind: output, shape index: {0}]   ;;  %s840_s5 = inlined_call_operand.hbm [shape: f32[2,8,128], index: 5, kind: output, shape index: {1}]  }
   0x1   :  { %13 = vsyncpa [#allocation3 + $0x1], 0 }
   0x2   :  { %14 = vsyncpa [#allocation4], 0 }
   0x3   :  { %16 = vsyncpa [#allocation4 + $0x1], 0  ;;  %s690_s18 = smov 0   ;;  %s692_s19 = smov 0  }
   0x4   :  { %s694_s20 = smov 0   ;;  %s696_s21 = smov 0  }
   0x5 LB: > { %s711_s22 = sadd.s32 4294967295, %s657_s21   ;;  %s480_s23 = sadd.s32 4294967294, %s657_s21   ;;  %s657_s21 = sphi %s696_s21, %s850_s21   ;;  %s653_s20 = sphi %s694_s20, %s849_s20   ;;  %s649_s19 = sphi %s692_s19, %s848_s19   ;;  %s645_s18 = sphi %s690_s18, %s847_s18  }
   0x6   : > { %s715_s24 = sadd.s32 1, %s657_s21   ;;  %s29_s25 = sadd.s32 1, %s653_s20 }
   0x7   : > { %s26_s26 = ssub.s32 %s657_s21, %s715_s24  ;;  %p36_p0 = scmp.ne.s32.totalorder %s653_s20, %s649_s19 }
   0x8   : > { %p27_p1 = scmp.eq.s32.totalorder %s26_s26, 0  ;;  %p37_p2 = scmp.eq.s32.totalorder %s657_s21, 0 }
   0x9   : > { %p42_p3 = scmp.ne.s32.totalorder %s649_s19, %s645_s18  ;;  %p43_p4 = scmp.eq.s32.totalorder %s711_s22, 0 }
   0xa   : > { %s727_s27 = scalar_select %p27_p1, %s653_s20, %s29_s25  }
   0xb   : > { %p729_p5 = por %p37_p2, %p36_p0  ;;  %p733_p6 = por %p43_p4, %p42_p3 }
   0xc   : > { %p160_p7 = scmp.eq.s32.totalorder %s711_s22, 1  ;;  %p166_p8 = scmp.eq.s32.totalorder %s480_s23, 1 }
   0xd   : > { %p520_p10 = scmp.lt.s32.totalorder %s657_s21, 2  ;;  %s192_s7 = sand.u32 1, %s653_s20  }
   0xe   : > { %p740_p11 = por %p160_p7, %p36_p0  ;;  %p744_p12 = por %p166_p8, %p42_p3 }
   0xf   : > { %s484_s8 = sshll.u32 %s657_s21, 2  ;;  %s483_s9 = sshll.u32 %s192_s7, 2 }
  0x10   : > { %s200_s12 = scalar_lea.hbm %s835_s0, %s484_s8  ;;  %s196_s14 = scalar_lea.vmem [#allocation2], %s483_s9 }
  0x11   : > { %s202_s13 = sshll.u32 %s200_s12, 4  ;;  %s204_s15 = sshll.u32 %s196_s14, 4  ;;  %s203_s13 = int_to_ptr.hbm [resolvable:$true] %s202_s13  ;;  %s205_s15 = int_to_ptr.vmem [resolvable:$true] %s204_s15 }
  0x12   : > { %p755_p13 = pnand %p520_p10, %p729_p5  ;;  %p485_p0 = scmp.ge.s32.totalorder %s657_s21, 1 }
  0x13   : > { %p216_p1 = scmp.lt.s32.totalorder %s657_s21, 3  ;;  %s193_s17 = scalar_lea.sflag [#allocation3], %s192_s7 }
  0x14   : > { %s561_s23 = sshra.s32 %s203_s13, 4  ;;  %p565_p3 = pneg %p755_p13  ;;  %s562_s23 = int_to_ptr.hbm [resolvable:$true] %s561_s23 }
  0x15   : > { %s563_s25 = scalar_lea.hbm %s562_s23, 4  ;;  %s568_s28 = scalar_lea.hbm %s835_s0, 8 }
  0x16   : > { %p564_p2 = scmp.ne.s32.totalorder %s562_s23, %s563_s25  ;;  %p569_p5 = scmp.lt.s32.totalorder %s562_s23, %s835_s0 }
  0x17   : > { %p570_p8 = scmp.lt.s32.totalorder %s568_s28, %s563_s25 }
  0x18   : > { %p566_p4 = pnand %p565_p3, %p564_p2 }
  0x19   : > { %p571_p10 = por %p570_p8, %p569_p5 }
  0x1a   : > { %p567_p7 = pneg %p566_p4 }
  0x1c   : > { %p572_p9 = pnand %p571_p10, %p567_p7 }
  0x1e   : > { %575 = shalt.err (!%p572_p9)
}
  0x1f   : > { %515 = dma.hbm_to_vmem [thread:$0]  (!%p755_p13), %s203_s13, 64, %s205_s15, %s193_s17  }
  0x20   : > { %p217_p2 = pnand %p485_p0, %p216_p1 }
  0x21   : > { %s776_s7 = sand.u32 (!%p217_p2), 1, %s649_s19  }
  0x22   : > { %220 = sbr.rel (%p217_p2) target bundleno = 616 (0x268), region = 36  ;;  %s486_s11 = sshll.u32 (!%p217_p2), %s776_s7, 2 }
  0x23   : > { %s223_s12 = scalar_lea.sflag (!%p217_p2), [#allocation3], %s776_s7  ;;  %s226_s14 = scalar_lea.vmem (!%p217_p2), [#allocation2], %s486_s11 }
  0x27   : > { %636 = dma.done.wait (%p733_p6), %s223_s12, 64  }
  0x28   : > { %638 = vsyncadd (%p733_p6), %s223_s12, 4294967232  ;;  %v505_v0 = vld [vmem:[%s836_s1 + $0x8] sm:$0xff]  ;;  %v504_v1 = vld [vmem:[%s836_s1] sm:$0xff]  ;;  %vm293_vm0 = vcmask 261120   ;;  %v659_v3 = vmov 0   ;;  %p262_p9 = scmp.lt.s32.totalorder %s711_s22, 1  ;;  %v321_v13 = vlaneseq }
  0x29   : > { %303 = vmatpush.bf16.msra.mxu0 %v505_v0  ;;  %v271_v2 = vld [vmem:[%s226_s14] sm:$0xf]  ;;  %555 = vset.pattern.permute.xlu0 %v659_v3  ;;  %s499_s14 = sshll.u32 %s711_s22, 3  ;;  %vm338_vm3 = vcmask 7168   ;;  %s611_s11 = scalar_lea.hbm %s840_s5, 16 }
  0x2a   : > { %s263_s29 = scalar_select %p262_p9, %s711_s22, 1  ;;  %v556_v4 = vld [vmem:[%s837_s2] ss:$0 sm:$0xff]  ;;  %v322_v14 = vand.u32 127, %v321_v13  ;;  %v332_v18 = vshrl.u32 %v321_v13, 7  ;;  %v334_v19 = vstv %s499_s14 }
  0x2b   : > { %s487_s22 = sshll.u32 %s776_s7, 3  ;;  %s369_s15 = scalar_lea.hbm %s840_s5, %s499_s14 }
  0x2c   : > { %s488_s26 = sshll.u32 %s263_s29, 3  ;;  %v335_v21 = vadd.s32 %v334_v19, %v332_v18  ;;  %s261_s17 = scalar_lea.vmem [#allocation5], %s487_s22 }
  0x2d   : > { %304 = vmatpush.bf16.msra.mxu0 %v504_v1  ;;  %s269_s9 = scalar_lea.vmem %s839_s4, %s488_s26  ;;  %s265_s12 = scalar_lea.vmem %s838_s3, %s488_s26 }
  0x2e   : > { %v277_v8 = vld [vmem:[%s265_s12] sm:$0xff]  ;;  %vm336_vm2 = vcmp.lt.s32.totalorder %v335_v21, 16  ;;  %s371_s29 = sshll.u32 %s261_s17, 4  ;;  %s373_s23 = sshll.u32 %s369_s15, 4  ;;  %s372_s29 = int_to_ptr.vmem [resolvable:$true] %s371_s29  ;;  %s374_s23 = int_to_ptr.hbm [resolvable:$true] %s373_s23 }
  0x2f   : > { %s356_s26 = scalar_lea.sflag [#allocation4], %s776_s7  ;;  %s605_s8 = sshra.s32 %s374_s23, 4  ;;  %s606_s8 = int_to_ptr.hbm [resolvable:$true] %s605_s8 }
  0x30   : > { %498 = vmatmul.msk.bf16.vlgmr.msra.gmra.mxu0 %vm293_vm0, %v271_v2  ;;  %s607_s28 = scalar_lea.hbm %s606_s8, 8  ;;  %p612_p1 = scmp.lt.s32.totalorder %s606_s8, %s840_s5 }
  0x31   : > { %p608_p6 = scmp.ne.s32.totalorder %s606_s8, %s607_s28  ;;  %p613_p3 = scmp.lt.s32.totalorder %s611_s11, %s607_s28 }
  0x33   : > { %p609_p13 = pnand %p608_p6, %p740_p11  ;;  %p614_p4 = por %p613_p3, %p612_p1 }
  0x35   : > { %p610_p0 = pneg %p609_p13 }
  0x37   : > { %p615_p7 = pnand %p614_p4, %p610_p0 }
  0xad   : > { %v306_v5 = vpop.f32.mrf.mxu0 }
  0xae   : > { %v307_v6 = vadd.f32 %v556_v4, %v306_v5 }
  0xb0   : > { %311 = vmax.xlane.f32.xlu0 %v307_v6  ;;  %310 = vst [vmem:[%s269_s9] sm:$0xff] %v307_v6 }
  0xb5   : > { %v308_v7 = vpop.f32.mrf.mxu0 }
  0xc4   : > { %324 = vperm.xlu0 %555, %v277_v8  }
 0x123   : > { %v312_v9 = vpop.xlane.xlu0 %311 }
 0x124   : > { %v313_v10 = vsub.f32 %v307_v6, %v312_v9 }
 0x126   : > { %v314_v11 = vmul.f32 1.442695, %v313_v10 }
 0x128   : > { %557 = vpow2.f32 %v314_v11 }
 0x12e   : > { %v558_v12 = vpop.eup %557 }
 0x12f   : > { %316 = vadd.xlane.f32.xlu1 %v558_v12 }
 0x136   : > { %v325_v15 = vpop.permute.xlu0 %324 }
 0x137   : > { %vm326_vm1 = vcmp.eq.s32.totalorder %v322_v14, %v325_v15 }
 0x138   : > { %v327_v16 = vsel %vm326_vm1, %v307_v6, 0.0 }
 0x139   : > { %328 = vadd.xlane.f32.xlu1 %v327_v16 }
 0x1a2   : > { %v317_v17 = vpop.xlane.xlu1 %316 }
 0x1a3   : > { %559 = vlog2.f32 %v317_v17 }
 0x1a9   : > { %v560_v20 = vpop.eup %559 }
 0x1aa   : > { %v319_v22 = vmul.f32 0.6931472, %v560_v20 }
 0x1ac   : > { %v320_v23 = vadd.f32 %v319_v22, %v312_v9  ;;  %v329_v24 = vpop.xlane.xlu1 %328 }
 0x1ae   : > { %v330_v25 = vsub.f32 %v320_v23, %v329_v24 }
 0x1b0   : > { %v337_v26 = vsel %vm336_vm2, %v330_v25, 0.0 }
 0x1b1   : > { %v339_v27 = vsel %vm338_vm3, %v337_v26, 0.0 }
 0x1b2   : > { %340 = vadd.xlane.f32.xlu2 %v339_v27 }
 0x225   : > { %v341_v28 = vpop.xlane.xlu2 %340 }
 0x226   : > { %v342_v29 = vrot.slane %v341_v28, 4 }
 0x228   : > { %v343_v30 = vadd.f32 %v342_v29, %v341_v28 }
 0x22a   : > { %v344_v31 = vrot.slane %v343_v30, 2 }
 0x22c   : > { %v345_v32 = vadd.f32 %v344_v31, %v343_v30 }
 0x22e   : > { %v346_v33 = vrot.slane %v345_v32, 1 }
 0x230   : > { %v347_v34 = vadd.f32 %v346_v33, %v345_v32 }
 0x232   : > { %506 = vpush %v347_v34 }
 0x263   : > { %s507_s25 = spop %506 }
 0x264   : > { %v349_v35 = vstv %s507_s25 }
 0x265   : > { %350 = vst [vmem:[%s261_s17] sm:$0xff] %v349_v35 }
 0x266   : > { %618 = shalt.err (!%p615_p7)
}
 0x267   : > { %510 = dma.vmem_to_hbm [thread:$0]  (%p740_p11), %s372_s29, 128, %s374_s23, %s356_s26  }
 0x268 PF: > { %s392_s7 = sand.u32 1, %s645_s18   ;;  %p846_p5 = scmp.ge.s32.totalorder %s657_s21, 2 }
 0x269   : > { %s393_s22 = scalar_lea.sflag [#allocation4], %s392_s7 }
 0x26a   : > { %p517_p8 = pnand %p846_p5, %p744_p12 }
 0x26c   : > { %p518_p10 = pneg %p517_p8 }
 0x26e   : > { %640 = dma.done.wait (%p518_p10), %s393_s22, 128  }
 0x26f   : > { %642 = vsyncadd (%p518_p10), %s393_s22, 4294967168  ;;  %p19_p2 = scmp.ge.s32.totalorder %s715_s24, 4   ;;  %s847_s18 = smov %s649_s19 }
 0x270   : > { %s848_s19 = smov %s653_s20  ;;  %s849_s20 = smov %s727_s27 }
 0x271   : > { %s850_s21 = smov %s715_s24  ;;  %21 = sbr.rel (!%p19_p2) target bundleno = 5 (0x5), region = 96 }
 0x276   :  { %399 = vsyncpa [#allocation3], 1 }
 0x277   :  { %401 = vsyncpa [#allocation3 + $0x1], 1 }
 0x278   :  { %402 = vsyncpa [#allocation4], 1 }
 0x279   :  { %404 = vsyncpa [#allocation4 + $0x1], 1 }

</bundles_post_ra>
